<compile_context>
chip_gen: v5e
topology: v5e:2x2
jax: 0.10.0
libtpu: 0.0.40
codegen_flags: <defaults>
</compile_context>

<pallas_src>
import jax
import jax.numpy as jnp
from jax import lax
from jax.experimental import pallas as pl
from jax.experimental.pallas import tpu as pltpu


def _round_up(n, m):
    return ((n + m - 1) // m) * m


def _vmem_capacity_bytes():
    """Physical VMEM per core; conservative (v7x, 64 MiB) fallback."""
    try:
        cap = getattr(pltpu.get_tpu_info(), "vmem_capacity_bytes", None)
        if cap:
            return int(cap)
    except Exception:
        pass
    return 64 * 1024 * 1024


def _disc_kernel(x_ref, w1_ref, b1_ref, w2_ref, b2_ref, w3_ref, b3_ref, o_ref):
    """One batch tile of the MLP forward.

    x:  (TB, D)   native dtype, streamed per grid step (cast to bf16 here)
    w1: (D, Hp)   bf16  VMEM-resident
    b1: (1, Hp)   f32
    w2: (Hp, Hp)  bf16  VMEM-resident
    b2: (1, Hp)   f32
    w3: (1, Hp)   bf16  final layer as a row vector
    b3: (1, 1)    f32   SMEM scalar
    o:  (1, TB)   f32   lane-dense output block
    """
    # Cast x at the MXU input (saves a separate wrapper-side HBM pass).
    x = x_ref[...].astype(jnp.bfloat16)

    # Linear 1: bf16 MXU matmul, f32 accumulate; bias + LeakyReLU(0.01) in f32.
    h = jnp.dot(x, w1_ref[...], preferred_element_type=jnp.float32) + b1_ref[...]
    h = jnp.maximum(h, 0.01 * h)          # LeakyReLU: mul+max (2 VALU ops)
    # Dropout -> identity (eval mode).

    # Linear 2: cast the activation to bf16 only at the MXU input.
    h = jnp.dot(h.astype(jnp.bfloat16), w2_ref[...],
                preferred_element_type=jnp.float32) + b2_ref[...]
    h = jnp.maximum(h, 0.01 * h)
    # Dropout -> identity (eval mode).

    # Linear 3 (Hp -> 1) as a lane-dense (1, TB) MXU matvec: contract the Hp
    # axes of w3 (1, Hp) and h (TB, Hp).  A (TB, 1) column output would be
    # TB/8 masked single-lane stores; (1, TB) is a full-width store.
    out = lax.dot_general(w3_ref[...], h.astype(jnp.bfloat16),
                          dimension_numbers=(((1,), (1,)), ((), ())),
                          preferred_element_type=jnp.float32)
    out = out + b3_ref[0, 0]
    o_ref[...] = jnp.clip(out, 1e-9, 1.0 - 1e-9)


def _call_pallas(xp, w1p, b1p, w2p, b2p, w3p, b3p, *, TB, num_tiles,
                 vmem_limit, cost, single_buffer_weights):
    Bp, D = xp.shape
    Hp = w1p.shape[1]
    # Resident operands: constant index_map; single-buffer them so the second
    # pipeline buffer (pure VMEM waste) is not allocated.
    res_kw = {"pipeline_mode": pl.Buffered(1)} if single_buffer_weights else {}
    return pl.pallas_call(
        _disc_kernel,
        out_shape=jax.ShapeDtypeStruct((1, Bp), jnp.float32),
        grid=(num_tiles,),
        in_specs=[
            pl.BlockSpec((TB, D), lambda i: (i, 0)),              # x: streamed
            pl.BlockSpec((D, Hp), lambda i: (0, 0), **res_kw),    # w1: resident
            pl.BlockSpec((1, Hp), lambda i: (0, 0), **res_kw),    # b1
            pl.BlockSpec((Hp, Hp), lambda i: (0, 0), **res_kw),   # w2: resident
            pl.BlockSpec((1, Hp), lambda i: (0, 0), **res_kw),    # b2
            pl.BlockSpec((1, Hp), lambda i: (0, 0), **res_kw),    # w3 row
            pl.BlockSpec(memory_space=pltpu.MemorySpace.SMEM),    # b3 scalar
        ],
        out_specs=pl.BlockSpec((1, TB), lambda i: (0, i)),        # lane-dense
        compiler_params=pltpu.CompilerParams(
            dimension_semantics=("parallel",),
            vmem_limit_bytes=vmem_limit),
        cost_estimate=cost,
    )(xp, w1p, b1p, w2p, b2p, w3p, b3p)


def discriminator_forward(x, params, *, block_rows=4096):
    """x: any shape whose flattening gives (-1, img_size). Returns (B, 1) f32."""
    w1, b1, w2, b2, w3, b3 = params
    D, H = w1.shape
    Hp = _round_up(H, 128)

    x2d = x.reshape(-1, D)
    B = x2d.shape[0]
    x_bytes = jnp.dtype(x2d.dtype).itemsize

    # ---- Generation-aware VMEM budget -----------------------------------
    vmem_cap = _vmem_capacity_bytes()
    vmem_budget = int(vmem_cap * 0.8)                      # ~20% headroom
    # Resident (single-buffered) weights / biases.
    bytes_resident = D * Hp * 2 + Hp * Hp * 2 + 2 * Hp * 4 + Hp * 2
    # Per batch row: double-buffered x tile + f32/bf16 activation temps
    # + double-buffered (1, TB) f32 output block.
    bytes_per_row = 2 * D * x_bytes + Hp * (4 + 4 + 2) + 2 * 4

    tb_cap = (vmem_budget - bytes_resident) // max(bytes_per_row, 1)
    TB = min(int(block_rows), int(tb_cap), _round_up(B, 128))
    TB = max(128, (TB // 128) * 128)        # (1, TB) out block needs 128-lane
    if TB >= 256:
        TB = (TB // 256) * 256              # fill 256-wide MXU M dim (v6e/v7x)

    num_tiles = pl.cdiv(B, TB)
    Bp = num_tiles * TB

    # x stays in its native dtype (no wrapper-side cast pass); pad rows only
    # when the batch is not a multiple of the tile.
    xp = x2d if Bp == B else jnp.pad(x2d, ((0, Bp - B), (0, 0)))

    pad_h = Hp - H
    w1p = jnp.pad(w1.astype(jnp.bfloat16), ((0, 0), (0, pad_h)))
    b1p = jnp.pad(b1.reshape(1, H).astype(jnp.float32), ((0, 0), (0, pad_h)))
    w2p = jnp.pad(w2.astype(jnp.bfloat16), ((0, pad_h), (0, pad_h)))
    b2p = jnp.pad(b2.reshape(1, H).astype(jnp.float32), ((0, 0), (0, pad_h)))
    w3p = jnp.pad(w3.reshape(1, H).astype(jnp.bfloat16), ((0, 0), (0, pad_h)))
    b3p = b3.reshape(1, 1).astype(jnp.float32)

    est_usage = bytes_resident + TB * bytes_per_row + (1 << 20)
    vmem_limit = int(min(vmem_cap * 0.9,
                         max(est_usage * 1.25, 32 * 1024 * 1024)))

    cost = pl.CostEstimate(
        flops=2 * Bp * (D * Hp + Hp * Hp + Hp),
        transcendentals=0,
        bytes_accessed=(Bp * D * x_bytes                 # x (native dtype)
                        + (D * Hp + Hp * Hp + Hp) * 2    # bf16 weights
                        + (2 * Hp + 1) * 4               # f32 biases
                        + Bp * 4),                       # f32 output
    )

    kwargs = dict(TB=TB, num_tiles=num_tiles, vmem_limit=vmem_limit, cost=cost)
    try:
        out = _call_pallas(xp, w1p, b1p, w2p, b2p, w3p, b3p,
                           single_buffer_weights=True, **kwargs)
    except Exception:
        # TODO(synk): pl.Buffered(1) (single-buffered resident weights) not
        # accepted by this jax build; fall back to default double-buffering.
        out = _call_pallas(xp, w1p, b1p, w2p, b2p, w3p, b3p,
                           single_buffer_weights=False, **kwargs)

    # Lane-dense (1, Bp) kernel output -> (B, 1) column in the wrapper.
    return out[0, :B].reshape(B, 1)


def init_params(key, img_size, hidden_size):
    """Deterministic synthetic parameters (PyTorch-Linear-style uniform init).

    Weights stored transposed w.r.t. torch.nn.Linear: (in, out)."""
    ks = jax.random.split(key, 6)

    def uni(k, shape, fan_in):
        bound = 1.0 / (fan_in ** 0.5)
        return jax.random.uniform(k, shape, jnp.float32, -bound, bound)

    w1 = uni(ks[0], (img_size, hidden_size), img_size)
    b1 = uni(ks[1], (1, hidden_size), img_size)
    w2 = uni(ks[2], (hidden_size, hidden_size), hidden_size)
    b2 = uni(ks[3], (1, hidden_size), hidden_size)
    w3 = uni(ks[4], (hidden_size, 1), hidden_size)
    b3 = uni(ks[5], (1, 1), hidden_size)
    return (w1, b1, w2, b2, w3, b3)


def _reference_forward(x, params, *, use_bf16=True):
    """Pure-JAX reference matching the PyTorch module (eval mode).

    use_bf16=True mirrors the kernel's precision (bf16 MXU inputs, f32 accum);
    use_bf16=False is the plain f32, torch-faithful reference."""
    w1, b1, w2, b2, w3, b3 = params
    D, H = w1.shape
    md = jnp.bfloat16 if use_bf16 else jnp.float32
    x2d = x.reshape(-1, D).astype(jnp.float32)

    h = jnp.dot(x2d.astype(md), w1.astype(md),
                preferred_element_type=jnp.float32) + b1.reshape(1, H)
    h = jnp.where(h >= 0, h, 0.01 * h)
    h = jnp.dot(h.astype(md), w2.astype(md),
                preferred_element_type=jnp.float32) + b2.reshape(1, H)
    h = jnp.where(h >= 0, h, 0.01 * h)
    out = jnp.dot(h.astype(md), w3.reshape(H, 1).astype(md),
                  preferred_element_type=jnp.float32) + b3.reshape(1, 1)
    return jnp.clip(out, 1e-9, 1.0 - 1e-9)


if __name__ == "__main__":
    img_size = 16
    hidden_size = 32

    key = jax.random.PRNGKey(0)
    k_x, k_p, k_x2 = jax.random.split(key, 3)

    # Example input: (2, 4, 16, 16); x.view(-1, img_size) -> (128, 16)
    x = jax.random.normal(k_x, (2, 4, 16, 16), dtype=jnp.float32)
    params = init_params(k_p, img_size, hidden_size)

    out = jax.block_until_ready(discriminator_forward(x, params))
    assert out.shape == (128, 1), out.shape

    ref_matched = _reference_forward(x, params, use_bf16=True)   # same precision path
    ref_f32 = _reference_forward(x, params, use_bf16=False)      # torch-faithful f32
    assert jnp.allclose(out, ref_matched, atol=2e-3, rtol=2e-3), \
        "mismatch vs matched-precision reference"
    assert jnp.allclose(out, ref_f32, atol=5e-2, rtol=5e-2), \
        "mismatch vs f32 reference"

    # Multi-tile streaming path: 1024 rows, TB=256 -> grid=(4,).
    x2 = jax.random.normal(k_x2, (8, 8, 16, 16), dtype=jnp.float32)
    out2 = jax.block_until_ready(discriminator_forward(x2, params, block_rows=256))
    assert out2.shape == (1024, 1), out2.shape
    assert jnp.allclose(out2, _reference_forward(x2, params, use_bf16=True),
                        atol=2e-3, rtol=2e-3), "mismatch on multi-tile path"

    print("KERNEL_OK")
</pallas_src>

<mosaic_0001>
module attributes {stable_mosaic.version = 11 : i64} {
  func.func @_disc_kernel(%arg0: i32, %arg1: memref<128x16xf32, #tpu.memory_space<vmem>>, %arg2: memref<16x128xbf16, #tpu.memory_space<vmem>>, %arg3: memref<1x128xf32, #tpu.memory_space<vmem>>, %arg4: memref<128x128xbf16, #tpu.memory_space<vmem>>, %arg5: memref<1x128xf32, #tpu.memory_space<vmem>>, %arg6: memref<1x128xbf16, #tpu.memory_space<vmem>>, %arg7: memref<1x1xf32, #tpu.memory_space<smem>>, %arg8: memref<1x128xf32, #tpu.memory_space<vmem>>) attributes {dimension_semantics = [#tpu.dimension_semantics<parallel>], iteration_bounds = array<i64: 1>, scalar_prefetch = 0 : i64, scratch_operands = 0 : i64, tpu.core_type = #tpu.core_type<tc>, window_params = [{transform_indices = @transform_0, window_bounds = array<i64: 128, 16>}, {pipeline_mode = #tpu.pipeline_mode<synchronous>, transform_indices = @transform_1, window_bounds = array<i64: 16, 128>}, {pipeline_mode = #tpu.pipeline_mode<synchronous>, transform_indices = @transform_2, window_bounds = array<i64: 1, 128>}, {pipeline_mode = #tpu.pipeline_mode<synchronous>, transform_indices = @transform_3, window_bounds = array<i64: 128, 128>}, {pipeline_mode = #tpu.pipeline_mode<synchronous>, transform_indices = @transform_4, window_bounds = array<i64: 1, 128>}, {pipeline_mode = #tpu.pipeline_mode<synchronous>, transform_indices = @transform_5, window_bounds = array<i64: 1, 128>}, {transform_indices = @transform_6, window_bounds = array<i64: 1, 1>}, {transform_indices = @transform_7, window_bounds = array<i64: 1, 128>}]} {
    %c0 = arith.constant 0 : index
    %c0_0 = arith.constant 0 : index
    %0 = vector.load %arg1[%c0, %c0_0] : memref<128x16xf32, #tpu.memory_space<vmem>>, vector<128x16xf32>
    %1 = arith.truncf %0 : vector<128x16xf32> to vector<128x16xbf16>
    %c0_1 = arith.constant 0 : index
    %c0_2 = arith.constant 0 : index
    %2 = vector.load %arg2[%c0_1, %c0_2] : memref<16x128xbf16, #tpu.memory_space<vmem>>, vector<16x128xbf16>
    %cst = arith.constant dense<0.000000e+00> : vector<128x128xf32>
    %3 = tpu.matmul %1, %2, %cst {dimension_numbers = #tpu.dot_dimension_numbers<[1], [0], [0], [1], [0, 0, 1, 1], [], []>} : vector<128x16xbf16>, vector<16x128xbf16>, vector<128x128xf32> -> vector<128x128xf32>
    %c0_3 = arith.constant 0 : index
    %c0_4 = arith.constant 0 : index
    %4 = vector.load %arg3[%c0_3, %c0_4] : memref<1x128xf32, #tpu.memory_space<vmem>>, vector<1x128xf32>
    %5 = vector.broadcast %4 : vector<1x128xf32> to vector<128x128xf32>
    %6 = arith.addf %3, %5 : vector<128x128xf32>
    %cst_5 = arith.constant 0.00999999977 : f32
    %7 = vector.broadcast %cst_5 : f32 to vector<128x128xf32>
    %8 = arith.mulf %7, %6 : vector<128x128xf32>
    %9 = arith.maximumf %6, %8 : vector<128x128xf32>
    %10 = arith.truncf %9 : vector<128x128xf32> to vector<128x128xbf16>
    %c0_6 = arith.constant 0 : index
    %c0_7 = arith.constant 0 : index
    %11 = vector.load %arg4[%c0_6, %c0_7] : memref<128x128xbf16, #tpu.memory_space<vmem>>, vector<128x128xbf16>
    %cst_8 = arith.constant dense<0.000000e+00> : vector<128x128xf32>
    %12 = tpu.matmul %10, %11, %cst_8 {dimension_numbers = #tpu.dot_dimension_numbers<[1], [0], [0], [1], [0, 0, 1, 1], [], []>} : vector<128x128xbf16>, vector<128x128xbf16>, vector<128x128xf32> -> vector<128x128xf32>
    %c0_9 = arith.constant 0 : index
    %c0_10 = arith.constant 0 : index
    %13 = vector.load %arg5[%c0_9, %c0_10] : memref<1x128xf32, #tpu.memory_space<vmem>>, vector<1x128xf32>
    %14 = vector.broadcast %13 : vector<1x128xf32> to vector<128x128xf32>
    %15 = arith.addf %12, %14 : vector<128x128xf32>
    %cst_11 = arith.constant 0.00999999977 : f32
    %16 = vector.broadcast %cst_11 : f32 to vector<128x128xf32>
    %17 = arith.mulf %16, %15 : vector<128x128xf32>
    %18 = arith.maximumf %15, %17 : vector<128x128xf32>
    %c0_12 = arith.constant 0 : index
    %c0_13 = arith.constant 0 : index
    %19 = vector.load %arg6[%c0_12, %c0_13] : memref<1x128xbf16, #tpu.memory_space<vmem>>, vector<1x128xbf16>
    %20 = arith.truncf %18 : vector<128x128xf32> to vector<128x128xbf16>
    %cst_14 = arith.constant dense<0.000000e+00> : vector<1x128xf32>
    %21 = tpu.matmul %19, %20, %cst_14 {dimension_numbers = #tpu.dot_dimension_numbers<[1], [1], [0], [0], [0, 0, 1, 0], [], []>} : vector<1x128xbf16>, vector<128x128xbf16>, vector<1x128xf32> -> vector<1x128xf32>
    %c0_15 = arith.constant 0 : index
    %c0_16 = arith.constant 0 : index
    %22 = memref.load %arg7[%c0_15, %c0_16] : memref<1x1xf32, #tpu.memory_space<smem>>
    %23 = vector.broadcast %22 : f32 to vector<1x128xf32>
    %24 = arith.addf %21, %23 : vector<1x128xf32>
    %cst_17 = arith.constant 9.99999971E-10 : f32
    %cst_18 = arith.constant 1.000000e+00 : f32
    %25 = vector.broadcast %cst_17 : f32 to vector<1x128xf32>
    %26 = arith.maximumf %25, %24 : vector<1x128xf32>
    %27 = vector.broadcast %cst_18 : f32 to vector<1x128xf32>
    %28 = arith.minimumf %27, %26 : vector<1x128xf32>
    %c0_19 = arith.constant 0 : index
    %c0_20 = arith.constant 0 : index
    %29 = vector.load %arg8[%c0_19, %c0_20] : memref<1x128xf32, #tpu.memory_space<vmem>>, vector<1x128xf32>
    tpu.vector_store %arg8[%c0_19, %c0_20], %28 {strides = array<i32>} : memref<1x128xf32, #tpu.memory_space<vmem>>, vector<1x128xf32>,
    return
  }
  func.func @transform_0(%arg0: i32) -> (i32, i32) {
    %c0_i32 = arith.constant 0 : i32
    %c0_i32_0 = arith.constant 0 : i32
    return %arg0, %c0_i32 : i32, i32
  }
  func.func @transform_1(%arg0: i32) -> (i32, i32) {
    %c0_i32 = arith.constant 0 : i32
    %c0_i32_0 = arith.constant 0 : i32
    %c0_i32_1 = arith.constant 0 : i32
    return %c0_i32, %c0_i32_0 : i32, i32
  }
  func.func @transform_2(%arg0: i32) -> (i32, i32) {
    %c0_i32 = arith.constant 0 : i32
    %c0_i32_0 = arith.constant 0 : i32
    %c0_i32_1 = arith.constant 0 : i32
    return %c0_i32, %c0_i32_0 : i32, i32
  }
  func.func @transform_3(%arg0: i32) -> (i32, i32) {
    %c0_i32 = arith.constant 0 : i32
    %c0_i32_0 = arith.constant 0 : i32
    %c0_i32_1 = arith.constant 0 : i32
    return %c0_i32, %c0_i32_0 : i32, i32
  }
  func.func @transform_4(%arg0: i32) -> (i32, i32) {
    %c0_i32 = arith.constant 0 : i32
    %c0_i32_0 = arith.constant 0 : i32
    %c0_i32_1 = arith.constant 0 : i32
    return %c0_i32, %c0_i32_0 : i32, i32
  }
  func.func @transform_5(%arg0: i32) -> (i32, i32) {
    %c0_i32 = arith.constant 0 : i32
    %c0_i32_0 = arith.constant 0 : i32
    %c0_i32_1 = arith.constant 0 : i32
    return %c0_i32, %c0_i32_0 : i32, i32
  }
  func.func @transform_6(%arg0: i32) -> (i32, i32) {
    %c0_i32 = arith.constant 0 : i32
    %c0_i32_0 = arith.constant 0 : i32
    %c0_i32_1 = arith.constant 0 : i32
    return %c0_i32, %c0_i32_0 : i32, i32
  }
  func.func @transform_7(%arg0: i32) -> (i32, i32) {
    %c0_i32 = arith.constant 0 : i32
    %c0_i32_0 = arith.constant 0 : i32
    return %c0_i32, %arg0 : i32, i32
  }
}

module attributes {stable_mosaic.version = 11 : i64} {
  func.func @_disc_kernel(%arg0: i32, %arg1: memref<128x16xf32, #tpu.memory_space<vmem>>, %arg2: memref<16x128xbf16, #tpu.memory_space<vmem>>, %arg3: memref<1x128xf32, #tpu.memory_space<vmem>>, %arg4: memref<128x128xbf16, #tpu.memory_space<vmem>>, %arg5: memref<1x128xf32, #tpu.memory_space<vmem>>, %arg6: memref<1x128xbf16, #tpu.memory_space<vmem>>, %arg7: memref<1x1xf32, #tpu.memory_space<smem>>, %arg8: memref<1x128xf32, #tpu.memory_space<vmem>>) attributes {dimension_semantics = [#tpu.dimension_semantics<parallel>], iteration_bounds = array<i64: 1>, scalar_prefetch = 0 : i64, scratch_operands = 0 : i64, tpu.core_type = #tpu.core_type<tc>, window_params = [{transform_indices = @transform_0, window_bounds = array<i64: 128, 16>}, {pipeline_mode = #tpu.pipeline_mode<synchronous>, transform_indices = @transform_1, window_bounds = array<i64: 16, 128>}, {pipeline_mode = #tpu.pipeline_mode<synchronous>, transform_indices = @transform_2, window_bounds = array<i64: 1, 128>}, {pipeline_mode = #tpu.pipeline_mode<synchronous>, transform_indices = @transform_3, window_bounds = array<i64: 128, 128>}, {pipeline_mode = #tpu.pipeline_mode<synchronous>, transform_indices = @transform_4, window_bounds = array<i64: 1, 128>}, {pipeline_mode = #tpu.pipeline_mode<synchronous>, transform_indices = @transform_5, window_bounds = array<i64: 1, 128>}, {transform_indices = @transform_6, window_bounds = array<i64: 1, 1>}, {transform_indices = @transform_7, window_bounds = array<i64: 1, 128>}]} {
    %c0 = arith.constant 0 : index
    %c0_0 = arith.constant 0 : index
    %0 = vector.load %arg1[%c0, %c0_0] : memref<128x16xf32, #tpu.memory_space<vmem>>, vector<128x16xf32>
    %1 = arith.truncf %0 : vector<128x16xf32> to vector<128x16xbf16>
    %c0_1 = arith.constant 0 : index
    %c0_2 = arith.constant 0 : index
    %2 = vector.load %arg2[%c0_1, %c0_2] : memref<16x128xbf16, #tpu.memory_space<vmem>>, vector<16x128xbf16>
    %cst = arith.constant dense<0.000000e+00> : vector<128x128xf32>
    %3 = tpu.matmul %1, %2, %cst {dimension_numbers = #tpu.dot_dimension_numbers<[1], [0], [0], [1], [0, 0, 1, 1], [], []>} : vector<128x16xbf16>, vector<16x128xbf16>, vector<128x128xf32> -> vector<128x128xf32>
    %c0_3 = arith.constant 0 : index
    %c0_4 = arith.constant 0 : index
    %4 = vector.load %arg3[%c0_3, %c0_4] : memref<1x128xf32, #tpu.memory_space<vmem>>, vector<1x128xf32>
    %5 = vector.broadcast %4 : vector<1x128xf32> to vector<128x128xf32>
    %6 = arith.addf %3, %5 : vector<128x128xf32>
    %cst_5 = arith.constant 0.00999999977 : f32
    %7 = vector.broadcast %cst_5 : f32 to vector<128x128xf32>
    %8 = arith.mulf %7, %6 : vector<128x128xf32>
    %9 = arith.maximumf %6, %8 : vector<128x128xf32>
    %10 = arith.truncf %9 : vector<128x128xf32> to vector<128x128xbf16>
    %c0_6 = arith.constant 0 : index
    %c0_7 = arith.constant 0 : index
    %11 = vector.load %arg4[%c0_6, %c0_7] : memref<128x128xbf16, #tpu.memory_space<vmem>>, vector<128x128xbf16>
    %cst_8 = arith.constant dense<0.000000e+00> : vector<128x128xf32>
    %12 = tpu.matmul %10, %11, %cst_8 {dimension_numbers = #tpu.dot_dimension_numbers<[1], [0], [0], [1], [0, 0, 1, 1], [], []>} : vector<128x128xbf16>, vector<128x128xbf16>, vector<128x128xf32> -> vector<128x128xf32>
    %c0_9 = arith.constant 0 : index
    %c0_10 = arith.constant 0 : index
    %13 = vector.load %arg5[%c0_9, %c0_10] : memref<1x128xf32, #tpu.memory_space<vmem>>, vector<1x128xf32>
    %14 = vector.broadcast %13 : vector<1x128xf32> to vector<128x128xf32>
    %15 = arith.addf %12, %14 : vector<128x128xf32>
    %cst_11 = arith.constant 0.00999999977 : f32
    %16 = vector.broadcast %cst_11 : f32 to vector<128x128xf32>
    %17 = arith.mulf %16, %15 : vector<128x128xf32>
    %18 = arith.maximumf %15, %17 : vector<128x128xf32>
    %c0_12 = arith.constant 0 : index
    %c0_13 = arith.constant 0 : index
    %19 = vector.load %arg6[%c0_12, %c0_13] : memref<1x128xbf16, #tpu.memory_space<vmem>>, vector<1x128xbf16>
    %20 = arith.truncf %18 : vector<128x128xf32> to vector<128x128xbf16>
    %cst_14 = arith.constant dense<0.000000e+00> : vector<1x128xf32>
    %21 = tpu.matmul %19, %20, %cst_14 {dimension_numbers = #tpu.dot_dimension_numbers<[1], [1], [0], [0], [0, 0, 1, 0], [], []>} : vector<1x128xbf16>, vector<128x128xbf16>, vector<1x128xf32> -> vector<1x128xf32>
    %c0_15 = arith.constant 0 : index
    %c0_16 = arith.constant 0 : index
    %22 = memref.load %arg7[%c0_15, %c0_16] : memref<1x1xf32, #tpu.memory_space<smem>>
    %23 = vector.broadcast %22 : f32 to vector<1x128xf32>
    %24 = arith.addf %21, %23 : vector<1x128xf32>
    %cst_17 = arith.constant 9.99999971E-10 : f32
    %cst_18 = arith.constant 1.000000e+00 : f32
    %25 = vector.broadcast %cst_17 : f32 to vector<1x128xf32>
    %26 = arith.maximumf %25, %24 : vector<1x128xf32>
    %27 = vector.broadcast %cst_18 : f32 to vector<1x128xf32>
    %28 = arith.minimumf %27, %26 : vector<1x128xf32>
    %c0_19 = arith.constant 0 : index
    %c0_20 = arith.constant 0 : index
    %29 = vector.load %arg8[%c0_19, %c0_20] : memref<1x128xf32, #tpu.memory_space<vmem>>, vector<1x128xf32>
    tpu.vector_store %arg8[%c0_19, %c0_20], %28 {strides = array<i32>} : memref<1x128xf32, #tpu.memory_space<vmem>>, vector<1x128xf32>,
    return
  }
  func.func @transform_0(%arg0: i32) -> (i32, i32) {
    %c0_i32 = arith.constant 0 : i32
    %c0_i32_0 = arith.constant 0 : i32
    return %arg0, %c0_i32 : i32, i32
  }
  func.func @transform_1(%arg0: i32) -> (i32, i32) {
    %c0_i32 = arith.constant 0 : i32
    %c0_i32_0 = arith.constant 0 : i32
    %c0_i32_1 = arith.constant 0 : i32
    return %c0_i32, %c0_i32_0 : i32, i32
  }
  func.func @transform_2(%arg0: i32) -> (i32, i32) {
    %c0_i32 = arith.constant 0 : i32
    %c0_i32_0 = arith.constant 0 : i32
    %c0_i32_1 = arith.constant 0 : i32
    return %c0_i32, %c0_i32_0 : i32, i32
  }
  func.func @transform_3(%arg0: i32) -> (i32, i32) {
    %c0_i32 = arith.constant 0 : i32
    %c0_i32_0 = arith.constant 0 : i32
    %c0_i32_1 = arith.constant 0 : i32
    return %c0_i32, %c0_i32_0 : i32, i32
  }
  func.func @transform_4(%arg0: i32) -> (i32, i32) {
    %c0_i32 = arith.constant 0 : i32
    %c0_i32_0 = arith.constant 0 : i32
    %c0_i32_1 = arith.constant 0 : i32
    return %c0_i32, %c0_i32_0 : i32, i32
  }
  func.func @transform_5(%arg0: i32) -> (i32, i32) {
    %c0_i32 = arith.constant 0 : i32
    %c0_i32_0 = arith.constant 0 : i32
    %c0_i32_1 = arith.constant 0 : i32
    return %c0_i32, %c0_i32_0 : i32, i32
  }
  func.func @transform_6(%arg0: i32) -> (i32, i32) {
    %c0_i32 = arith.constant 0 : i32
    %c0_i32_0 = arith.constant 0 : i32
    %c0_i32_1 = arith.constant 0 : i32
    return %c0_i32, %c0_i32_0 : i32, i32
  }
  func.func @transform_7(%arg0: i32) -> (i32, i32) {
    %c0_i32 = arith.constant 0 : i32
    %c0_i32_0 = arith.constant 0 : i32
    return %c0_i32, %arg0 : i32, i32
  }
}

</mosaic_0001>

<bundles_post_ra>
// kernel: tpu_custom_call.1
= control target key start
LH: loop header
LB: loop body
LE: loop exit
PB: predicated region body
PF: predicated region fallthrough
CT: control target
= control target key end

     0   :  { %vm65_vm0 = vcmask 130048   ;;  %s639_s0 = inlined_call_operand.vmem [shape: f32[128,16], index: 0, kind: input, shape index: {}]   ;;  %s640_s1 = inlined_call_operand.vmem [shape: bf16[16,128], index: 1, kind: input, shape index: {}]   ;;  %s641_s2 = inlined_call_operand.vmem [shape: f32[1,128], index: 2, kind: input, shape index: {}]   ;;  %s642_s3 = inlined_call_operand.vmem [shape: bf16[128,128], index: 3, kind: input, shape index: {}]   ;;  %s643_s4 = inlined_call_operand.vmem [shape: f32[1,128], index: 4, kind: input, shape index: {}]   ;;  %s644_s5 = inlined_call_operand.vmem [shape: bf16[1,128], index: 5, kind: input, shape index: {}]   ;;  %s645_s6 = inlined_call_operand.<no memory space> [shape: f32[1,1], index: 6, kind: input, shape index: {}]   ;;  %s646_s7 = inlined_call_operand.hbm [shape: f32[1,128], index: 7, kind: output, shape index: {}]  }
   0x1   :  { %v415_v0 = vld [vmem:[%s640_s1] sm:$0xff]  ;;  %v30_v2 = vld [vmem:[%s639_s0 + $0x8] sm:$0xff] }
   0x2   :  { %v29_v1 = vld [vmem:[%s639_s0] sm:$0xff]  ;;  %97 = vmatpush.bf16.msra.mxu0 %v415_v0 }
   0x3   :  { %v45_v3 = vpack.c.bf16 %v30_v2, %v29_v1 }
   0x4   :  { %13 = vsyncpa [#allocation4], 0  ;;  %v31_v4 = vld [vmem:[%s639_s0 + $0x10] sm:$0xff]  ;;  %v32_v5 = vld [vmem:[%s639_s0 + $0x18] sm:$0xff]  ;;  %s461_s30 = smov [#allocation3]   ;;  %s362_s10 = sshll.u32 %s646_s7, 4  ;;  %s363_s10 = int_to_ptr.hbm [resolvable:$true] %s362_s10 }
   0x5   :  { %375 = vmatmul.msk.bf16.vlgmr.msra.gmra.mxu0 %vm65_vm0, %v45_v3  ;;  %v46_v6 = vpack.c.bf16 %v32_v5, %v31_v4  ;;  %v33_v7 = vld [vmem:[%s639_s0 + $0x20] sm:$0xff]  ;;  %v34_v8 = vld [vmem:[%s639_s0 + $0x28] sm:$0xff]  ;;  %v35_v10 = vld [vmem:[%s639_s0 + $0x30] sm:$0xff]  ;;  %s360_s8 = sshll.u32 %s461_s30, 4  ;;  %s361_s8 = int_to_ptr.vmem [resolvable:$true] %s360_s8 }
   0x6   :  { %v47_v9 = vpack.c.bf16 %v34_v8, %v33_v7  ;;  %v36_v11 = vld [vmem:[%s639_s0 + $0x38] sm:$0xff]  ;;  %v37_v13 = vld [vmem:[%s639_s0 + $0x40] sm:$0xff]  ;;  %v38_v14 = vld [vmem:[%s639_s0 + $0x48] sm:$0xff] }
   0x7   :  { %v48_v12 = vpack.c.bf16 %v36_v11, %v35_v10  ;;  %v49_v15 = vpack.c.bf16 %v38_v14, %v37_v13  ;;  %v423_v16 = vld [vmem:[%s642_s3 + $0x38] sm:$0xff]  ;;  %v39_v17 = vld [vmem:[%s639_s0 + $0x50] sm:$0xff]  ;;  %v421_v21 = vld [vmem:[%s642_s3 + $0x28] sm:$0xff] }
   0x8   :  { %247 = vmatpush.bf16.msra.mxu1 %v423_v16  ;;  %424 = vmatpush.bf16.msra.mxu3 %v423_v16  ;;  %v40_v18 = vld [vmem:[%s639_s0 + $0x58] sm:$0xff]  ;;  %v422_v20 = vld [vmem:[%s642_s3 + $0x30] sm:$0xff]  ;;  %v420_v22 = vld [vmem:[%s642_s3 + $0x20] sm:$0xff] }
   0x9   :  { %v50_v19 = vpack.c.bf16 %v40_v18, %v39_v17  ;;  %v41_v23 = vld [vmem:[%s639_s0 + $0x60] sm:$0xff]  ;;  %v42_v24 = vld [vmem:[%s639_s0 + $0x68] sm:$0xff]  ;;  %v419_v26 = vld [vmem:[%s642_s3 + $0x18] sm:$0xff] }
   0xa   :  { %v51_v25 = vpack.c.bf16 %v42_v24, %v41_v23  ;;  %v418_v27 = vld [vmem:[%s642_s3 + $0x10] sm:$0xff]  ;;  %v417_v28 = vld [vmem:[%s642_s3 + $0x8] sm:$0xff]  ;;  %v44_v30 = vld [vmem:[%s639_s0 + $0x78] sm:$0xff] }
   0xb   :  { %v43_v29 = vld [vmem:[%s639_s0 + $0x70] sm:$0xff]  ;;  %v416_v31 = vld [vmem:[%s642_s3] sm:$0xff] }
   0xc   :  { %248 = vmatpush.bf16.msra.mxu1 %v422_v20  ;;  %425 = vmatpush.bf16.msra.mxu3 %v422_v20  ;;  %v52_v32 = vpack.c.bf16 %v44_v30, %v43_v29  ;;  %v588_v34 = vld [vmem:[%s641_s2] ss:$0 sm:$0xff] }
  0x10   :  { %249 = vmatpush.bf16.msra.mxu1 %v421_v21  ;;  %426 = vmatpush.bf16.msra.mxu3 %v421_v21 }
  0x14   :  { %250 = vmatpush.bf16.msra.mxu1 %v420_v22  ;;  %427 = vmatpush.bf16.msra.mxu3 %v420_v22 }
  0x15   :  { %376 = vmatmul.msk.bf16.gmra.mxu0 %vm65_vm0, %v46_v6 }
  0x18   :  { %251 = vmatpush.bf16.msra.mxu1 %v419_v26  ;;  %428 = vmatpush.bf16.msra.mxu3 %v419_v26 }
  0x1c   :  { %252 = vmatpush.bf16.msra.mxu1 %v418_v27  ;;  %429 = vmatpush.bf16.msra.mxu3 %v418_v27 }
  0x20   :  { %253 = vmatpush.bf16.msra.mxu1 %v417_v28  ;;  %430 = vmatpush.bf16.msra.mxu3 %v417_v28 }
  0x24   :  { %254 = vmatpush.bf16.msra.mxu1 %v416_v31  ;;  %431 = vmatpush.bf16.msra.mxu3 %v416_v31 }
  0x25   :  { %377 = vmatmul.msk.bf16.gmra.mxu0 %vm65_vm0, %v47_v9 }
  0x35   :  { %378 = vmatmul.msk.bf16.gmra.mxu0 %vm65_vm0, %v48_v12 }
  0x45   :  { %379 = vmatmul.msk.bf16.gmra.mxu0 %vm65_vm0, %v49_v15 }
  0x55   :  { %380 = vmatmul.msk.bf16.gmra.mxu0 %vm65_vm0, %v50_v19 }
  0x65   :  { %381 = vmatmul.msk.bf16.gmra.mxu0 %vm65_vm0, %v51_v25 }
  0x75   :  { %382 = vmatmul.msk.bf16.gmra.mxu0 %vm65_vm0, %v52_v32 }
  0x82   :  { %v99_v33 = vpop.f32.mrf.mxu0 }
  0x83   :  { %v100_v35 = vadd.f32 %v588_v34, %v99_v33 }
  0x85   :  { %v139_v37 = vmul.f32 0.01, %v100_v35 }
  0x87   :  { %v155_v40 = vmax.f32 %v100_v35, %v139_v37 }
  0x8a   :  { %v101_v36 = vpop.f32.mrf.mxu0 }
  0x8b   :  { %v102_v38 = vadd.f32 %v588_v34, %v101_v36 }
  0x8d   :  { %v140_v39 = vmul.f32 0.01, %v102_v38 }
  0x8f   :  { %v156_v41 = vmax.f32 %v102_v38, %v140_v39 }
  0x91   :  { %v171_v42 = vpack.c.bf16 %v156_v41, %v155_v40 }
  0x92   :  { %v104_v43 = vpop.f32.mrf.mxu0 }
  0x93   :  { %255 = vmatmul.bf16.vlgmr.msra.gmra.mxu1 %v171_v42  ;;  %v105_v44 = vadd.f32 %v588_v34, %v104_v43 }
  0x95   :  { %v141_v46 = vmul.f32 0.01, %v105_v44 }
  0x97   :  { %v157_v49 = vmax.f32 %v105_v44, %v141_v46  ;;  %v609_v44 = vld [vmem:[%s643_s4] ss:$0 sm:$0xff] }
  0x9a   :  { %v106_v45 = vpop.f32.mrf.mxu0 }
  0x9b   :  { %v107_v47 = vadd.f32 %v588_v34, %v106_v45 }
  0x9d   :  { %v142_v48 = vmul.f32 0.01, %v107_v47 }
  0x9f   :  { %v158_v50 = vmax.f32 %v107_v47, %v142_v48 }
  0xa1   :  { %v172_v51 = vpack.c.bf16 %v158_v50, %v157_v49 }
  0xa2   :  { %v109_v52 = vpop.f32.mrf.mxu0 }
  0xa3   :  { %260 = vmatmul.bf16.gmra.mxu1 %v172_v51  ;;  %v110_v53 = vadd.f32 %v588_v34, %v109_v52 }
  0xa5   :  { %v143_v55 = vmul.f32 0.01, %v110_v53 }
  0xa7   :  { %v159_v58 = vmax.f32 %v110_v53, %v143_v55 }
  0xaa   :  { %v111_v54 = vpop.f32.mrf.mxu0 }
  0xab   :  { %v112_v56 = vadd.f32 %v588_v34, %v111_v54 }
  0xad   :  { %v144_v57 = vmul.f32 0.01, %v112_v56 }
  0xaf   :  { %v160_v59 = vmax.f32 %v112_v56, %v144_v57 }
  0xb1   :  { %v173_v60 = vpack.c.bf16 %v160_v59, %v159_v58 }
  0xb2   :  { %v114_v61 = vpop.f32.mrf.mxu0 }
  0xb3   :  { %265 = vmatmul.bf16.gmra.mxu1 %v173_v60  ;;  %v115_v62 = vadd.f32 %v588_v34, %v114_v61 }
  0xb5   :  { %v145_v0 = vmul.f32 0.01, %v115_v62 }
  0xb7   :  { %v161_v3 = vmax.f32 %v115_v62, %v145_v0 }
  0xba   :  { %v116_v63 = vpop.f32.mrf.mxu0 }
  0xbb   :  { %v117_v1 = vadd.f32 %v588_v34, %v116_v63 }
  0xbd   :  { %v146_v2 = vmul.f32 0.01, %v117_v1 }
  0xbf   :  { %v162_v4 = vmax.f32 %v117_v1, %v146_v2 }
  0xc1   :  { %v174_v5 = vpack.c.bf16 %v162_v4, %v161_v3 }
  0xc2   :  { %v119_v6 = vpop.f32.mrf.mxu0 }
  0xc3   :  { %270 = vmatmul.bf16.gmra.mxu1 %v174_v5  ;;  %v120_v7 = vadd.f32 %v588_v34, %v119_v6 }
  0xc5   :  { %v147_v9 = vmul.f32 0.01, %v120_v7 }
  0xc7   :  { %v163_v12 = vmax.f32 %v120_v7, %v147_v9 }
  0xca   :  { %v121_v8 = vpop.f32.mrf.mxu0 }
  0xcb   :  { %v122_v10 = vadd.f32 %v588_v34, %v121_v8 }
  0xcd   :  { %v148_v11 = vmul.f32 0.01, %v122_v10 }
  0xcf   :  { %v164_v13 = vmax.f32 %v122_v10, %v148_v11 }
  0xd1   :  { %v175_v14 = vpack.c.bf16 %v164_v13, %v163_v12 }
  0xd2   :  { %v124_v15 = vpop.f32.mrf.mxu0 }
  0xd3   :  { %275 = vmatmul.bf16.gmra.mxu1 %v175_v14  ;;  %v125_v16 = vadd.f32 %v588_v34, %v124_v15 }
  0xd5   :  { %v149_v18 = vmul.f32 0.01, %v125_v16 }
  0xd7   :  { %v165_v21 = vmax.f32 %v125_v16, %v149_v18 }
  0xda   :  { %v126_v17 = vpop.f32.mrf.mxu0 }
  0xdb   :  { %v127_v19 = vadd.f32 %v588_v34, %v126_v17 }
  0xdd   :  { %v150_v20 = vmul.f32 0.01, %v127_v19 }
  0xdf   :  { %v166_v22 = vmax.f32 %v127_v19, %v150_v20 }
  0xe1   :  { %v176_v23 = vpack.c.bf16 %v166_v22, %v165_v21 }
  0xe2   :  { %v129_v24 = vpop.f32.mrf.mxu0 }
  0xe3   :  { %280 = vmatmul.bf16.vlgmr.msra.gmra.mxu3 %v176_v23  ;;  %v130_v25 = vadd.f32 %v588_v34, %v129_v24 }
  0xe5   :  { %v151_v27 = vmul.f32 0.01, %v130_v25 }
  0xe7   :  { %v167_v30 = vmax.f32 %v130_v25, %v151_v27 }
  0xea   :  { %v131_v26 = vpop.f32.mrf.mxu0 }
  0xeb   :  { %v132_v28 = vadd.f32 %v588_v34, %v131_v26 }
  0xed   :  { %v152_v29 = vmul.f32 0.01, %v132_v28 }
  0xef   :  { %v168_v31 = vmax.f32 %v132_v28, %v152_v29 }
  0xf1   :  { %v177_v32 = vpack.c.bf16 %v168_v31, %v167_v30 }
  0xf2   :  { %v134_v33 = vpop.f32.mrf.mxu0 }
  0xf3   :  { %285 = vmatmul.bf16.gmra.mxu3 %v177_v32  ;;  %v135_v35 = vadd.f32 %v588_v34, %v134_v33 }
  0xf5   :  { %v153_v37 = vmul.f32 0.01, %v135_v35 }
  0xf7   :  { %v169_v40 = vmax.f32 %v135_v35, %v153_v37 }
  0xfa   :  { %v136_v36 = vpop.f32.mrf.mxu0 }
  0xfb   :  { %v137_v38 = vadd.f32 %v588_v34, %v136_v36 }
  0xfd   :  { %v154_v39 = vmul.f32 0.01, %v137_v38 }
  0xff   :  { %v170_v41 = vmax.f32 %v137_v38, %v154_v39 }
 0x101   :  { %v178_v42 = vpack.c.bf16 %v170_v41, %v169_v40 }
 0x103   :  { %290 = vmatmul.bf16.gmra.mxu3 %v178_v42 }
 0x110   :  { %v256_v43 = vpop.f32.mrf.mxu1 }
 0x111   :  { %v257_v45 = vadd.f32 %v609_v44, %v256_v43 }
 0x113   :  { %v296_v47 = vmul.f32 0.01, %v257_v45 }
 0x115   :  { %v312_v50 = vmax.f32 %v257_v45, %v296_v47 }
 0x118   :  { %v258_v46 = vpop.f32.mrf.mxu1 }
 0x119   :  { %v259_v48 = vadd.f32 %v609_v44, %v258_v46 }
 0x11b   :  { %v297_v49 = vmul.f32 0.01, %v259_v48 }
 0x11d   :  { %v313_v34 = vmax.f32 %v259_v48, %v297_v49 }
 0x11f   :  { %v613_v51 = vpack.c.bf16 %v313_v34, %v312_v50 }
 0x120   :  { %v261_v52 = vpop.f32.mrf.mxu1 }
 0x121   :  { %v262_v53 = vadd.f32 %v609_v44, %v261_v52 }
 0x123   :  { %v298_v55 = vmul.f32 0.01, %v262_v53 }
 0x125   :  { %v314_v58 = vmax.f32 %v262_v53, %v298_v55  ;;  %v328_v53 = vld [vmem:[%s644_s5] sm:$0x1] }
 0x128   :  { %v263_v54 = vpop.f32.mrf.mxu1 }
 0x129   :  { %v264_v56 = vadd.f32 %v609_v44, %v263_v54 }
 0x12b   :  { %v299_v57 = vmul.f32 0.01, %v264_v56 }
 0x12d   :  { %v315_v59 = vmax.f32 %v264_v56, %v299_v57 }
 0x12f   :  { %v330_v60 = vpack.c.bf16 %v315_v59, %v314_v58 }
 0x130   :  { %v266_v62 = vpop.f32.mrf.mxu1 }
 0x131   :  { %v267_v45 = vadd.f32 %v609_v44, %v266_v62 }
 0x133   :  { %v300_v49 = vmul.f32 0.01, %v267_v45 }
 0x135   :  { %v316_v34 = vmax.f32 %v267_v45, %v300_v49 }
 0x138   :  { %v268_v0 = vpop.f32.mrf.mxu1 }
 0x139   :  { %v269_v42 = vadd.f32 %v609_v44, %v268_v0 }
 0x13b   :  { %v301_v47 = vmul.f32 0.01, %v269_v42 }
 0x13d   :  { %v317_v50 = vmax.f32 %v269_v42, %v301_v47 }
 0x13f   :  { %v331_v52 = vpack.c.bf16 %v317_v50, %v316_v34 }
 0x140   :  { %v271_v3 = vpop.f32.mrf.mxu1 }
 0x141   :  { %v272_v37 = vadd.f32 %v609_v44, %v271_v3 }
 0x143   :  { %v302_v41 = vmul.f32 0.01, %v272_v37 }
 0x145   :  { %v318_v46 = vmax.f32 %v272_v37, %v302_v41 }
 0x148   :  { %v273_v5 = vpop.f32.mrf.mxu1 }
 0x149   :  { %v274_v35 = vadd.f32 %v609_v44, %v273_v5 }
 0x14b   :  { %v303_v39 = vmul.f32 0.01, %v274_v35 }
 0x14d   :  { %v319_v43 = vmax.f32 %v274_v35, %v303_v39 }
 0x14f   :  { %v332_v48 = vpack.c.bf16 %v319_v43, %v318_v46 }
 0x150   :  { %v276_v15 = vpop.f32.mrf.mxu1 }
 0x151   :  { %v277_v29 = vadd.f32 %v609_v44, %v276_v15 }
 0x153   :  { %v304_v33 = vmul.f32 0.01, %v277_v29 }
 0x155   :  { %v320_v38 = vmax.f32 %v277_v29, %v304_v33 }
 0x158   :  { %v278_v25 = vpop.f32.mrf.mxu1 }
 0x159   :  { %v279_v27 = vadd.f32 %v609_v44, %v278_v25 }
 0x15b   :  { %v305_v31 = vmul.f32 0.01, %v279_v27 }
 0x15d   :  { %v321_v36 = vmax.f32 %v279_v27, %v305_v31 }
 0x15f   :  { %v333_v40 = vpack.c.bf16 %v321_v36, %v320_v38 }
 0x166   :  { %v281_v61 = vpop.f32.mrf.mxu3 }
 0x167   :  { %v282_v21 = vadd.f32 %v609_v44, %v281_v61 }
 0x169   :  { %v306_v26 = vmul.f32 0.01, %v282_v21 }
 0x16b   :  { %v322_v30 = vmax.f32 %v282_v21, %v306_v26 }
 0x16e   :  { %v283_v63 = vpop.f32.mrf.mxu3 }
 0x16f   :  { %v284_v19 = vadd.f32 %v609_v44, %v283_v63 }
 0x171   :  { %v307_v23 = vmul.f32 0.01, %v284_v19 }
 0x173   :  { %v323_v28 = vmax.f32 %v284_v19, %v307_v23 }
 0x175   :  { %v334_v32 = vpack.c.bf16 %v323_v28, %v322_v30 }
 0x176   :  { %v286_v1 = vpop.f32.mrf.mxu3 }
 0x177   :  { %v287_v12 = vadd.f32 %v609_v44, %v286_v1 }
 0x179   :  { %v308_v18 = vmul.f32 0.01, %v287_v12 }
 0x17b   :  { %v324_v22 = vmax.f32 %v287_v12, %v308_v18 }
 0x17e   :  { %v288_v2 = vpop.f32.mrf.mxu3 }
 0x17f   :  { %v289_v10 = vadd.f32 %v609_v44, %v288_v2 }
 0x181   :  { %v309_v16 = vmul.f32 0.01, %v289_v10 }
 0x183   :  { %v325_v20 = vmax.f32 %v289_v10, %v309_v16 }
 0x185   :  { %v335_v24 = vpack.c.bf16 %v325_v20, %v324_v22 }
 0x186   :  { %v291_v4 = vpop.f32.mrf.mxu3 }
 0x187   :  { %v292_v6 = vadd.f32 %v609_v44, %v291_v4 }
 0x189   :  { %v310_v8 = vmul.f32 0.01, %v292_v6 }
 0x18b   :  { %v326_v13 = vmax.f32 %v292_v6, %v310_v8 }
 0x18e   :  { %v293_v7 = vpop.f32.mrf.mxu3 }
 0x18f   :  { %v294_v9 = vadd.f32 %v609_v44, %v293_v7  ;;  %v338_v44 = vstv %s645_s6 }
 0x191   :  { %v311_v11 = vmul.f32 0.01, %v294_v9 }
 0x193   :  { %v327_v14 = vmax.f32 %v294_v9, %v311_v11 }
 0x195   :  { %v336_v17 = vpack.c.bf16 %v327_v14, %v326_v13 }
 0x197   :  { %339 = vmatpush.bf16.xpose.msra.mxu2 %v336_v17 }
 0x19f   :  { %340 = vmatpush.bf16.xpose.msra.mxu2 %v335_v24 }
 0x1a7   :  { %341 = vmatpush.bf16.xpose.msra.mxu2 %v334_v32 }
 0x1af   :  { %342 = vmatpush.bf16.xpose.msra.mxu2 %v333_v40 }
 0x1b7   :  { %343 = vmatpush.bf16.xpose.msra.mxu2 %v332_v48 }
 0x1bf   :  { %344 = vmatpush.bf16.xpose.msra.mxu2 %v331_v52 }
 0x1c7   :  { %345 = vmatpush.bf16.xpose.msra.mxu2 %v330_v60 }
 0x1cf   :  { %346 = vmatpush.bf16.xpose.msra.mxu2 %v613_v51 }
 0x1d6   :  { %347 = vmatmul.bf16.vlgmr.msra.gmra.mxu2 %v328_v53 }
 0x259   :  { %v348_v54 = vpop.f32.mrf.mxu2 }
 0x25a   :  { %v349_v55 = vadd.f32 %v348_v54, %v338_v44 }
 0x25c   :  { %v352_v56 = vmax.f32 %v349_v55, 1e-09 }
 0x25e   :  { %v353_v57 = vmin.f32 %v352_v56, 1.0 }
 0x260   :  { %354 = vst [vmem:[#allocation3] sm:$0x1] %v353_v57 }
 0x261   :  { %v350_v51 = vpop.f32.mrf.mxu2  ;;  %365 = dma.vmem_to_hbm [thread:$0]  %s361_s8, 16, %s363_s10, [#allocation4]  }
 0x262   :  { %459 = dma.done.wait [#allocation4], 16  }
 0x263   :  { %460 = vsyncadd [#allocation4], 4294967280 }
 0x264   :  { %370 = vsyncpa [#allocation4], 1 }

// kernel: tpu_custom_call.1
= control target key start
LH: loop header
LB: loop body
LE: loop exit
PB: predicated region body
PF: predicated region fallthrough
CT: control target
= control target key end

     0   :  { %vm65_vm0 = vcmask 130048   ;;  %s639_s0 = inlined_call_operand.vmem [shape: f32[128,16], index: 0, kind: input, shape index: {}]   ;;  %s640_s1 = inlined_call_operand.vmem [shape: bf16[16,128], index: 1, kind: input, shape index: {}]   ;;  %s641_s2 = inlined_call_operand.vmem [shape: f32[1,128], index: 2, kind: input, shape index: {}]   ;;  %s642_s3 = inlined_call_operand.vmem [shape: bf16[128,128], index: 3, kind: input, shape index: {}]   ;;  %s643_s4 = inlined_call_operand.vmem [shape: f32[1,128], index: 4, kind: input, shape index: {}]   ;;  %s644_s5 = inlined_call_operand.vmem [shape: bf16[1,128], index: 5, kind: input, shape index: {}]   ;;  %s645_s6 = inlined_call_operand.<no memory space> [shape: f32[1,1], index: 6, kind: input, shape index: {}]   ;;  %s646_s7 = inlined_call_operand.hbm [shape: f32[1,128], index: 7, kind: output, shape index: {}]  }
   0x1   :  { %v415_v0 = vld [vmem:[%s640_s1] sm:$0xff]  ;;  %v30_v2 = vld [vmem:[%s639_s0 + $0x8] sm:$0xff] }
   0x2   :  { %v29_v1 = vld [vmem:[%s639_s0] sm:$0xff]  ;;  %97 = vmatpush.bf16.msra.mxu0 %v415_v0 }
   0x3   :  { %v45_v3 = vpack.c.bf16 %v30_v2, %v29_v1 }
   0x4   :  { %13 = vsyncpa [#allocation4], 0  ;;  %v31_v4 = vld [vmem:[%s639_s0 + $0x10] sm:$0xff]  ;;  %v32_v5 = vld [vmem:[%s639_s0 + $0x18] sm:$0xff]  ;;  %s461_s30 = smov [#allocation3]   ;;  %s362_s10 = sshll.u32 %s646_s7, 4  ;;  %s363_s10 = int_to_ptr.hbm [resolvable:$true] %s362_s10 }
   0x5   :  { %375 = vmatmul.msk.bf16.vlgmr.msra.gmra.mxu0 %vm65_vm0, %v45_v3  ;;  %v46_v6 = vpack.c.bf16 %v32_v5, %v31_v4  ;;  %v33_v7 = vld [vmem:[%s639_s0 + $0x20] sm:$0xff]  ;;  %v34_v8 = vld [vmem:[%s639_s0 + $0x28] sm:$0xff]  ;;  %v35_v10 = vld [vmem:[%s639_s0 + $0x30] sm:$0xff]  ;;  %s360_s8 = sshll.u32 %s461_s30, 4  ;;  %s361_s8 = int_to_ptr.vmem [resolvable:$true] %s360_s8 }
   0x6   :  { %v47_v9 = vpack.c.bf16 %v34_v8, %v33_v7  ;;  %v36_v11 = vld [vmem:[%s639_s0 + $0x38] sm:$0xff]  ;;  %v37_v13 = vld [vmem:[%s639_s0 + $0x40] sm:$0xff]  ;;  %v38_v14 = vld [vmem:[%s639_s0 + $0x48] sm:$0xff] }
   0x7   :  { %v48_v12 = vpack.c.bf16 %v36_v11, %v35_v10  ;;  %v49_v15 = vpack.c.bf16 %v38_v14, %v37_v13  ;;  %v423_v16 = vld [vmem:[%s642_s3 + $0x38] sm:$0xff]  ;;  %v39_v17 = vld [vmem:[%s639_s0 + $0x50] sm:$0xff]  ;;  %v421_v21 = vld [vmem:[%s642_s3 + $0x28] sm:$0xff] }
   0x8   :  { %247 = vmatpush.bf16.msra.mxu1 %v423_v16  ;;  %424 = vmatpush.bf16.msra.mxu3 %v423_v16  ;;  %v40_v18 = vld [vmem:[%s639_s0 + $0x58] sm:$0xff]  ;;  %v422_v20 = vld [vmem:[%s642_s3 + $0x30] sm:$0xff]  ;;  %v420_v22 = vld [vmem:[%s642_s3 + $0x20] sm:$0xff] }
   0x9   :  { %v50_v19 = vpack.c.bf16 %v40_v18, %v39_v17  ;;  %v41_v23 = vld [vmem:[%s639_s0 + $0x60] sm:$0xff]  ;;  %v42_v24 = vld [vmem:[%s639_s0 + $0x68] sm:$0xff]  ;;  %v419_v26 = vld [vmem:[%s642_s3 + $0x18] sm:$0xff] }
   0xa   :  { %v51_v25 = vpack.c.bf16 %v42_v24, %v41_v23  ;;  %v418_v27 = vld [vmem:[%s642_s3 + $0x10] sm:$0xff]  ;;  %v417_v28 = vld [vmem:[%s642_s3 + $0x8] sm:$0xff]  ;;  %v44_v30 = vld [vmem:[%s639_s0 + $0x78] sm:$0xff] }
   0xb   :  { %v43_v29 = vld [vmem:[%s639_s0 + $0x70] sm:$0xff]  ;;  %v416_v31 = vld [vmem:[%s642_s3] sm:$0xff] }
   0xc   :  { %248 = vmatpush.bf16.msra.mxu1 %v422_v20  ;;  %425 = vmatpush.bf16.msra.mxu3 %v422_v20  ;;  %v52_v32 = vpack.c.bf16 %v44_v30, %v43_v29  ;;  %v588_v34 = vld [vmem:[%s641_s2] ss:$0 sm:$0xff] }
  0x10   :  { %249 = vmatpush.bf16.msra.mxu1 %v421_v21  ;;  %426 = vmatpush.bf16.msra.mxu3 %v421_v21 }
  0x14   :  { %250 = vmatpush.bf16.msra.mxu1 %v420_v22  ;;  %427 = vmatpush.bf16.msra.mxu3 %v420_v22 }
  0x15   :  { %376 = vmatmul.msk.bf16.gmra.mxu0 %vm65_vm0, %v46_v6 }
  0x18   :  { %251 = vmatpush.bf16.msra.mxu1 %v419_v26  ;;  %428 = vmatpush.bf16.msra.mxu3 %v419_v26 }
  0x1c   :  { %252 = vmatpush.bf16.msra.mxu1 %v418_v27  ;;  %429 = vmatpush.bf16.msra.mxu3 %v418_v27 }
  0x20   :  { %253 = vmatpush.bf16.msra.mxu1 %v417_v28  ;;  %430 = vmatpush.bf16.msra.mxu3 %v417_v28 }
  0x24   :  { %254 = vmatpush.bf16.msra.mxu1 %v416_v31  ;;  %431 = vmatpush.bf16.msra.mxu3 %v416_v31 }
  0x25   :  { %377 = vmatmul.msk.bf16.gmra.mxu0 %vm65_vm0, %v47_v9 }
  0x35   :  { %378 = vmatmul.msk.bf16.gmra.mxu0 %vm65_vm0, %v48_v12 }
  0x45   :  { %379 = vmatmul.msk.bf16.gmra.mxu0 %vm65_vm0, %v49_v15 }
  0x55   :  { %380 = vmatmul.msk.bf16.gmra.mxu0 %vm65_vm0, %v50_v19 }
  0x65   :  { %381 = vmatmul.msk.bf16.gmra.mxu0 %vm65_vm0, %v51_v25 }
  0x75   :  { %382 = vmatmul.msk.bf16.gmra.mxu0 %vm65_vm0, %v52_v32 }
  0x82   :  { %v99_v33 = vpop.f32.mrf.mxu0 }
  0x83   :  { %v100_v35 = vadd.f32 %v588_v34, %v99_v33 }
  0x85   :  { %v139_v37 = vmul.f32 0.01, %v100_v35 }
  0x87   :  { %v155_v40 = vmax.f32 %v100_v35, %v139_v37 }
  0x8a   :  { %v101_v36 = vpop.f32.mrf.mxu0 }
  0x8b   :  { %v102_v38 = vadd.f32 %v588_v34, %v101_v36 }
  0x8d   :  { %v140_v39 = vmul.f32 0.01, %v102_v38 }
  0x8f   :  { %v156_v41 = vmax.f32 %v102_v38, %v140_v39 }
  0x91   :  { %v171_v42 = vpack.c.bf16 %v156_v41, %v155_v40 }
  0x92   :  { %v104_v43 = vpop.f32.mrf.mxu0 }
  0x93   :  { %255 = vmatmul.bf16.vlgmr.msra.gmra.mxu1 %v171_v42  ;;  %v105_v44 = vadd.f32 %v588_v34, %v104_v43 }
  0x95   :  { %v141_v46 = vmul.f32 0.01, %v105_v44 }
  0x97   :  { %v157_v49 = vmax.f32 %v105_v44, %v141_v46  ;;  %v609_v44 = vld [vmem:[%s643_s4] ss:$0 sm:$0xff] }
  0x9a   :  { %v106_v45 = vpop.f32.mrf.mxu0 }
  0x9b   :  { %v107_v47 = vadd.f32 %v588_v34, %v106_v45 }
  0x9d   :  { %v142_v48 = vmul.f32 0.01, %v107_v47 }
  0x9f   :  { %v158_v50 = vmax.f32 %v107_v47, %v142_v48 }
  0xa1   :  { %v172_v51 = vpack.c.bf16 %v158_v50, %v157_v49 }
  0xa2   :  { %v109_v52 = vpop.f32.mrf.mxu0 }
  0xa3   :  { %260 = vmatmul.bf16.gmra.mxu1 %v172_v51  ;;  %v110_v53 = vadd.f32 %v588_v34, %v109_v52 }
  0xa5   :  { %v143_v55 = vmul.f32 0.01, %v110_v53 }
  0xa7   :  { %v159_v58 = vmax.f32 %v110_v53, %v143_v55 }
  0xaa   :  { %v111_v54 = vpop.f32.mrf.mxu0 }
  0xab   :  { %v112_v56 = vadd.f32 %v588_v34, %v111_v54 }
  0xad   :  { %v144_v57 = vmul.f32 0.01, %v112_v56 }
  0xaf   :  { %v160_v59 = vmax.f32 %v112_v56, %v144_v57 }
  0xb1   :  { %v173_v60 = vpack.c.bf16 %v160_v59, %v159_v58 }
  0xb2   :  { %v114_v61 = vpop.f32.mrf.mxu0 }
  0xb3   :  { %265 = vmatmul.bf16.gmra.mxu1 %v173_v60  ;;  %v115_v62 = vadd.f32 %v588_v34, %v114_v61 }
  0xb5   :  { %v145_v0 = vmul.f32 0.01, %v115_v62 }
  0xb7   :  { %v161_v3 = vmax.f32 %v115_v62, %v145_v0 }
  0xba   :  { %v116_v63 = vpop.f32.mrf.mxu0 }
  0xbb   :  { %v117_v1 = vadd.f32 %v588_v34, %v116_v63 }
  0xbd   :  { %v146_v2 = vmul.f32 0.01, %v117_v1 }
  0xbf   :  { %v162_v4 = vmax.f32 %v117_v1, %v146_v2 }
  0xc1   :  { %v174_v5 = vpack.c.bf16 %v162_v4, %v161_v3 }
  0xc2   :  { %v119_v6 = vpop.f32.mrf.mxu0 }
  0xc3   :  { %270 = vmatmul.bf16.gmra.mxu1 %v174_v5  ;;  %v120_v7 = vadd.f32 %v588_v34, %v119_v6 }
  0xc5   :  { %v147_v9 = vmul.f32 0.01, %v120_v7 }
  0xc7   :  { %v163_v12 = vmax.f32 %v120_v7, %v147_v9 }
  0xca   :  { %v121_v8 = vpop.f32.mrf.mxu0 }
  0xcb   :  { %v122_v10 = vadd.f32 %v588_v34, %v121_v8 }
  0xcd   :  { %v148_v11 = vmul.f32 0.01, %v122_v10 }
  0xcf   :  { %v164_v13 = vmax.f32 %v122_v10, %v148_v11 }
  0xd1   :  { %v175_v14 = vpack.c.bf16 %v164_v13, %v163_v12 }
  0xd2   :  { %v124_v15 = vpop.f32.mrf.mxu0 }
  0xd3   :  { %275 = vmatmul.bf16.gmra.mxu1 %v175_v14  ;;  %v125_v16 = vadd.f32 %v588_v34, %v124_v15 }
  0xd5   :  { %v149_v18 = vmul.f32 0.01, %v125_v16 }
  0xd7   :  { %v165_v21 = vmax.f32 %v125_v16, %v149_v18 }
  0xda   :  { %v126_v17 = vpop.f32.mrf.mxu0 }
  0xdb   :  { %v127_v19 = vadd.f32 %v588_v34, %v126_v17 }
  0xdd   :  { %v150_v20 = vmul.f32 0.01, %v127_v19 }
  0xdf   :  { %v166_v22 = vmax.f32 %v127_v19, %v150_v20 }
  0xe1   :  { %v176_v23 = vpack.c.bf16 %v166_v22, %v165_v21 }
  0xe2   :  { %v129_v24 = vpop.f32.mrf.mxu0 }
  0xe3   :  { %280 = vmatmul.bf16.vlgmr.msra.gmra.mxu3 %v176_v23  ;;  %v130_v25 = vadd.f32 %v588_v34, %v129_v24 }
  0xe5   :  { %v151_v27 = vmul.f32 0.01, %v130_v25 }
  0xe7   :  { %v167_v30 = vmax.f32 %v130_v25, %v151_v27 }
  0xea   :  { %v131_v26 = vpop.f32.mrf.mxu0 }
  0xeb   :  { %v132_v28 = vadd.f32 %v588_v34, %v131_v26 }
  0xed   :  { %v152_v29 = vmul.f32 0.01, %v132_v28 }
  0xef   :  { %v168_v31 = vmax.f32 %v132_v28, %v152_v29 }
  0xf1   :  { %v177_v32 = vpack.c.bf16 %v168_v31, %v167_v30 }
  0xf2   :  { %v134_v33 = vpop.f32.mrf.mxu0 }
  0xf3   :  { %285 = vmatmul.bf16.gmra.mxu3 %v177_v32  ;;  %v135_v35 = vadd.f32 %v588_v34, %v134_v33 }
  0xf5   :  { %v153_v37 = vmul.f32 0.01, %v135_v35 }
  0xf7   :  { %v169_v40 = vmax.f32 %v135_v35, %v153_v37 }
  0xfa   :  { %v136_v36 = vpop.f32.mrf.mxu0 }
  0xfb   :  { %v137_v38 = vadd.f32 %v588_v34, %v136_v36 }
  0xfd   :  { %v154_v39 = vmul.f32 0.01, %v137_v38 }
  0xff   :  { %v170_v41 = vmax.f32 %v137_v38, %v154_v39 }
 0x101   :  { %v178_v42 = vpack.c.bf16 %v170_v41, %v169_v40 }
 0x103   :  { %290 = vmatmul.bf16.gmra.mxu3 %v178_v42 }
 0x110   :  { %v256_v43 = vpop.f32.mrf.mxu1 }
 0x111   :  { %v257_v45 = vadd.f32 %v609_v44, %v256_v43 }
 0x113   :  { %v296_v47 = vmul.f32 0.01, %v257_v45 }
 0x115   :  { %v312_v50 = vmax.f32 %v257_v45, %v296_v47 }
 0x118   :  { %v258_v46 = vpop.f32.mrf.mxu1 }
 0x119   :  { %v259_v48 = vadd.f32 %v609_v44, %v258_v46 }
 0x11b   :  { %v297_v49 = vmul.f32 0.01, %v259_v48 }
 0x11d   :  { %v313_v34 = vmax.f32 %v259_v48, %v297_v49 }
 0x11f   :  { %v613_v51 = vpack.c.bf16 %v313_v34, %v312_v50 }
 0x120   :  { %v261_v52 = vpop.f32.mrf.mxu1 }
 0x121   :  { %v262_v53 = vadd.f32 %v609_v44, %v261_v52 }
 0x123   :  { %v298_v55 = vmul.f32 0.01, %v262_v53 }
 0x125   :  { %v314_v58 = vmax.f32 %v262_v53, %v298_v55  ;;  %v328_v53 = vld [vmem:[%s644_s5] sm:$0x1] }
 0x128   :  { %v263_v54 = vpop.f32.mrf.mxu1 }
 0x129   :  { %v264_v56 = vadd.f32 %v609_v44, %v263_v54 }
 0x12b   :  { %v299_v57 = vmul.f32 0.01, %v264_v56 }
 0x12d   :  { %v315_v59 = vmax.f32 %v264_v56, %v299_v57 }
 0x12f   :  { %v330_v60 = vpack.c.bf16 %v315_v59, %v314_v58 }
 0x130   :  { %v266_v62 = vpop.f32.mrf.mxu1 }
 0x131   :  { %v267_v45 = vadd.f32 %v609_v44, %v266_v62 }
 0x133   :  { %v300_v49 = vmul.f32 0.01, %v267_v45 }
 0x135   :  { %v316_v34 = vmax.f32 %v267_v45, %v300_v49 }
 0x138   :  { %v268_v0 = vpop.f32.mrf.mxu1 }
 0x139   :  { %v269_v42 = vadd.f32 %v609_v44, %v268_v0 }
 0x13b   :  { %v301_v47 = vmul.f32 0.01, %v269_v42 }
 0x13d   :  { %v317_v50 = vmax.f32 %v269_v42, %v301_v47 }
 0x13f   :  { %v331_v52 = vpack.c.bf16 %v317_v50, %v316_v34 }
 0x140   :  { %v271_v3 = vpop.f32.mrf.mxu1 }
 0x141   :  { %v272_v37 = vadd.f32 %v609_v44, %v271_v3 }
 0x143   :  { %v302_v41 = vmul.f32 0.01, %v272_v37 }
 0x145   :  { %v318_v46 = vmax.f32 %v272_v37, %v302_v41 }
 0x148   :  { %v273_v5 = vpop.f32.mrf.mxu1 }
 0x149   :  { %v274_v35 = vadd.f32 %v609_v44, %v273_v5 }
 0x14b   :  { %v303_v39 = vmul.f32 0.01, %v274_v35 }
 0x14d   :  { %v319_v43 = vmax.f32 %v274_v35, %v303_v39 }
 0x14f   :  { %v332_v48 = vpack.c.bf16 %v319_v43, %v318_v46 }
 0x150   :  { %v276_v15 = vpop.f32.mrf.mxu1 }
 0x151   :  { %v277_v29 = vadd.f32 %v609_v44, %v276_v15 }
 0x153   :  { %v304_v33 = vmul.f32 0.01, %v277_v29 }
 0x155   :  { %v320_v38 = vmax.f32 %v277_v29, %v304_v33 }
 0x158   :  { %v278_v25 = vpop.f32.mrf.mxu1 }
 0x159   :  { %v279_v27 = vadd.f32 %v609_v44, %v278_v25 }
 0x15b   :  { %v305_v31 = vmul.f32 0.01, %v279_v27 }
 0x15d   :  { %v321_v36 = vmax.f32 %v279_v27, %v305_v31 }
 0x15f   :  { %v333_v40 = vpack.c.bf16 %v321_v36, %v320_v38 }
 0x166   :  { %v281_v61 = vpop.f32.mrf.mxu3 }
 0x167   :  { %v282_v21 = vadd.f32 %v609_v44, %v281_v61 }
 0x169   :  { %v306_v26 = vmul.f32 0.01, %v282_v21 }
 0x16b   :  { %v322_v30 = vmax.f32 %v282_v21, %v306_v26 }
 0x16e   :  { %v283_v63 = vpop.f32.mrf.mxu3 }
 0x16f   :  { %v284_v19 = vadd.f32 %v609_v44, %v283_v63 }
 0x171   :  { %v307_v23 = vmul.f32 0.01, %v284_v19 }
 0x173   :  { %v323_v28 = vmax.f32 %v284_v19, %v307_v23 }
 0x175   :  { %v334_v32 = vpack.c.bf16 %v323_v28, %v322_v30 }
 0x176   :  { %v286_v1 = vpop.f32.mrf.mxu3 }
 0x177   :  { %v287_v12 = vadd.f32 %v609_v44, %v286_v1 }
 0x179   :  { %v308_v18 = vmul.f32 0.01, %v287_v12 }
 0x17b   :  { %v324_v22 = vmax.f32 %v287_v12, %v308_v18 }
 0x17e   :  { %v288_v2 = vpop.f32.mrf.mxu3 }
 0x17f   :  { %v289_v10 = vadd.f32 %v609_v44, %v288_v2 }
 0x181   :  { %v309_v16 = vmul.f32 0.01, %v289_v10 }
 0x183   :  { %v325_v20 = vmax.f32 %v289_v10, %v309_v16 }
 0x185   :  { %v335_v24 = vpack.c.bf16 %v325_v20, %v324_v22 }
 0x186   :  { %v291_v4 = vpop.f32.mrf.mxu3 }
 0x187   :  { %v292_v6 = vadd.f32 %v609_v44, %v291_v4 }
 0x189   :  { %v310_v8 = vmul.f32 0.01, %v292_v6 }
 0x18b   :  { %v326_v13 = vmax.f32 %v292_v6, %v310_v8 }
 0x18e   :  { %v293_v7 = vpop.f32.mrf.mxu3 }
 0x18f   :  { %v294_v9 = vadd.f32 %v609_v44, %v293_v7  ;;  %v338_v44 = vstv %s645_s6 }
 0x191   :  { %v311_v11 = vmul.f32 0.01, %v294_v9 }
 0x193   :  { %v327_v14 = vmax.f32 %v294_v9, %v311_v11 }
 0x195   :  { %v336_v17 = vpack.c.bf16 %v327_v14, %v326_v13 }
 0x197   :  { %339 = vmatpush.bf16.xpose.msra.mxu2 %v336_v17 }
 0x19f   :  { %340 = vmatpush.bf16.xpose.msra.mxu2 %v335_v24 }
 0x1a7   :  { %341 = vmatpush.bf16.xpose.msra.mxu2 %v334_v32 }
 0x1af   :  { %342 = vmatpush.bf16.xpose.msra.mxu2 %v333_v40 }
 0x1b7   :  { %343 = vmatpush.bf16.xpose.msra.mxu2 %v332_v48 }
 0x1bf   :  { %344 = vmatpush.bf16.xpose.msra.mxu2 %v331_v52 }
 0x1c7   :  { %345 = vmatpush.bf16.xpose.msra.mxu2 %v330_v60 }
 0x1cf   :  { %346 = vmatpush.bf16.xpose.msra.mxu2 %v613_v51 }
 0x1d6   :  { %347 = vmatmul.bf16.vlgmr.msra.gmra.mxu2 %v328_v53 }
 0x259   :  { %v348_v54 = vpop.f32.mrf.mxu2 }
 0x25a   :  { %v349_v55 = vadd.f32 %v348_v54, %v338_v44 }
 0x25c   :  { %v352_v56 = vmax.f32 %v349_v55, 1e-09 }
 0x25e   :  { %v353_v57 = vmin.f32 %v352_v56, 1.0 }
 0x260   :  { %354 = vst [vmem:[#allocation3] sm:$0x1] %v353_v57 }
 0x261   :  { %v350_v51 = vpop.f32.mrf.mxu2  ;;  %365 = dma.vmem_to_hbm [thread:$0]  %s361_s8, 16, %s363_s10, [#allocation4]  }
 0x262   :  { %459 = dma.done.wait [#allocation4], 16  }
 0x263   :  { %460 = vsyncadd [#allocation4], 4294967280 }
 0x264   :  { %370 = vsyncpa [#allocation4], 1 }

</bundles_post_ra>
